<compile_context>
chip_gen: v7x
topology: tpu7x:2x2x1
jax: 0.10.0
libtpu: 0.0.40
codegen_flags: <defaults>
</compile_context>

<pallas_src>
import jax
import jax.numpy as jnp
from jax import lax
from jax.experimental import pallas as pl
from jax.experimental.pallas import tpu as pltpu


def _cdiv(a, b):
    return -(-a // b)


def _round_up(a, b):
    return _cdiv(a, b) * b


def _tpu_topology():
    """Returns (vmem_capacity_bytes, tensorcores_per_chip) with safe fallbacks."""
    vmem_cap = 64 * 1024 * 1024          # conservative (v7x-sized) default
    cores = 1
    try:
        info = pltpu.get_tpu_info()
        cap = getattr(info, "vmem_capacity_bytes", None)
        if cap:
            vmem_cap = int(cap)
        for name in ("num_cores", "num_tensorcores", "tensorcore_count",
                     "cores_per_chip"):
            val = getattr(info, name, None)
            if val:
                cores = max(1, min(2, int(val)))
                break
    except Exception:
        pass
    return vmem_cap, cores


def _make_kernel(inv_n_mel, inv_n_gate, tile_r, n_rows, steps):
    def kernel(mel_out_ref, mel_post_ref, mel_tgt_ref,
               gate_out_ref, gate_tgt_ref, out_ref, sse_vec, gate_acc):
        c = pl.program_id(0)          # core-split axis (size 1 on 1-TC chips)
        s = pl.program_id(1)          # "arbitrary" reduction axis

        @pl.when(s == 0)
        def _init():
            sse_vec[...] = jnp.zeros_like(sse_vec)
            gate_acc[...] = jnp.zeros_like(gate_acc)

        # --- gate BCE-with-logits: tiny resident block, computed once -------
        @pl.when(jnp.logical_and(c == 0, s == 0))
        def _gate():
            x = gate_out_ref[...].astype(jnp.float32)
            y = gate_tgt_ref[...].astype(jnp.float32)
            # numerically-stable form used by torch.nn.BCEWithLogitsLoss:
            #   max(x,0) - x*y + log1p(exp(-|x|))
            bce = jnp.maximum(x, 0.0) - x * y + jnp.log1p(jnp.exp(-jnp.abs(x)))
            gate_acc[...] += jnp.sum(bce)

        # --- fused squared-error for both mel terms --------------------------
        mt = mel_tgt_ref[...].astype(jnp.float32)
        d1 = mel_out_ref[...].astype(jnp.float32) - mt
        d2 = mel_post_ref[...].astype(jnp.float32) - mt
        e = d1 * d1 + d2 * d2                                    # (tile_r, T)

        # Rows still valid for this tile.  Only the last (ragged) tile — and
        # any fully-empty trailing tile on an odd split — needs masking;
        # Pallas does not zero out-of-bounds block regions.
        rows_left = n_rows - (c * steps + s) * tile_r

        @pl.when(rows_left >= tile_r)
        def _full_tile():
            # deferred reduce: fold rows into the (1, T) vector accumulator;
            # no cross-lane XLU reduce / scalar broadcast in the hot loop.
            sse_vec[...] += jnp.sum(e, axis=0, keepdims=True)

        @pl.when(rows_left < tile_r)
        def _ragged_tile():
            rid = lax.broadcasted_iota(jnp.int32, e.shape, 0)
            masked = jnp.where(rid < rows_left, e, 0.0)
            sse_vec[...] += jnp.sum(masked, axis=0, keepdims=True)

        @pl.when(s == pl.num_programs(1) - 1)
        def _finalize():
            # single cross-lane reduce + scale, once per core; every element
            # of this core's (8,128) output block carries the same partial.
            out_ref[...] = (jnp.sum(sse_vec[...]) * inv_n_mel
                            + gate_acc[...] * inv_n_gate)

    return kernel


def tacotron2_loss(model_output, targets):
    """model_output = (mel_out, mel_out_postnet, gate_out, _);
       targets      = (mel_target, gate_target)."""
    mel_out, mel_out_postnet, gate_out, _ = model_output
    mel_target, gate_target = targets

    B, n_mel, T = mel_out.shape
    R = B * n_mel
    itemsize = jnp.dtype(mel_out.dtype).itemsize

    # glue: free reshapes only (contiguous), T stays on lanes
    mel_out_2d = mel_out.reshape(R, T)
    mel_post_2d = mel_out_postnet.reshape(R, T)
    mel_tgt_2d = mel_target.reshape(R, T)
    if gate_out.ndim >= 2:
        gate_out_2d = gate_out.reshape(gate_out.shape[0], -1)
        gate_tgt_2d = gate_target.reshape(gate_out.shape[0], -1)
    else:
        gate_out_2d = gate_out.reshape(1, -1)
        gate_tgt_2d = gate_target.reshape(1, -1)
    Bg, Tg = gate_out_2d.shape

    # PyTorch-mean divisors: ALWAYS the original element counts.
    inv_n_mel = 1.0 / float(B * n_mel * T)
    inv_n_gate = 1.0 / float(Bg * Tg)

    # ---- generation-aware VMEM budget ---------------------------------------
    T_pad = _round_up(T, 128)                       # physical lane footprint
    gate_bytes = (_round_up(Bg, 8) * _round_up(Tg, 128)
                  * (jnp.dtype(gate_out_2d.dtype).itemsize
                     + jnp.dtype(gate_tgt_2d.dtype).itemsize))
    acc_bytes = 8 * T_pad * 4 + 8 * 128 * 4         # sse_vec + gate_acc scratch
    out_bytes = 2 * 2 * 8 * 128 * 4                 # output blocks (buffered)

    vmem_cap, n_cores = _tpu_topology()
    # ~3/4 of physical VMEM, always leaving >=16 MiB headroom:
    #   128 MiB parts (v5e/v6e) -> 96 MiB limit; 64 MiB parts (v7x) -> 48 MiB.
    vmem_limit = int(max(32 << 20, min(vmem_cap * 3 // 4, vmem_cap - (16 << 20))))

    fixed_bytes = gate_bytes + acc_bytes + out_bytes
    tile_budget = max(1 << 20, vmem_limit - fixed_bytes - (4 << 20))

    # ---- row-tile selection (physical footprint, no wrapper-side padding) ---
    row_align = 8 if itemsize >= 4 else (16 if itemsize == 2 else 32)
    per_row = 3 * 2 * T_pad * itemsize              # 3 mel inputs x 2 buffers
    max_rows = (tile_budget // per_row) // row_align * row_align
    tile_r = int(max(row_align, min(max_rows, _round_up(R, row_align))))

    num_tiles = _cdiv(R, tile_r)
    nc = n_cores if (n_cores >= 2 and num_tiles >= n_cores) else 1
    steps = _cdiv(num_tiles, nc)
    last_block = num_tiles - 1                      # clamp empty trailing tiles

    def mel_index(c, s):
        # clamp so an empty trailing tile (odd split) never indexes OOB; its
        # contribution is masked to zero in-kernel via rows_left <= 0.
        return (jnp.minimum(c * steps + s, last_block), 0)

    mel_spec = pl.BlockSpec((tile_r, T), mel_index)
    gate_spec = pl.BlockSpec(memory_space=pltpu.MemorySpace.VMEM)   # resident

    gate_itemsize = jnp.dtype(gate_out_2d.dtype).itemsize
    cost = pl.CostEstimate(
        flops=int(6 * R * T + 6 * Bg * Tg),
        transcendentals=int(2 * Bg * Tg),
        bytes_accessed=int(3 * R * T * itemsize + 2 * Bg * Tg * gate_itemsize
                           + nc * 8 * 128 * 4),
    )

    sem0 = pltpu.CORE_PARALLEL if nc > 1 else pltpu.ARBITRARY
    out = pl.pallas_call(
        _make_kernel(inv_n_mel, inv_n_gate, tile_r, R, steps),
        out_shape=jax.ShapeDtypeStruct((nc * 8, 128), jnp.float32),
        grid_spec=pltpu.PrefetchScalarGridSpec(
            num_scalar_prefetch=0,
            grid=(nc, steps),
            in_specs=[mel_spec, mel_spec, mel_spec, gate_spec, gate_spec],
            out_specs=pl.BlockSpec((8, 128), lambda c, s: (c, 0)),
            scratch_shapes=[pltpu.VMEM((1, T), jnp.float32),    # SSE vector acc
                            pltpu.VMEM((8, 128), jnp.float32)], # BCE acc
        ),
        compiler_params=pltpu.CompilerParams(
            dimension_semantics=(sem0, pltpu.ARBITRARY),
            vmem_limit_bytes=vmem_limit,
        ),
        cost_estimate=cost,
    )(mel_out_2d, mel_post_2d, mel_tgt_2d, gate_out_2d, gate_tgt_2d)

    # one partial per core-split slice; element [c*8, 0] holds partial c.
    return jnp.sum(out[::8, 0])


def _reference_loss(model_output, targets):
    mel_out, mel_out_postnet, gate_out, _ = model_output
    mel_target, gate_target = targets
    mel_loss = jnp.mean((mel_out - mel_target) ** 2) + \
               jnp.mean((mel_out_postnet - mel_target) ** 2)
    x = gate_out.reshape(-1, 1)
    y = gate_target.reshape(-1, 1)
    bce = jnp.maximum(x, 0.0) - x * y + jnp.log1p(jnp.exp(-jnp.abs(x)))
    return mel_loss + jnp.mean(bce)


if __name__ == "__main__":
    key = jax.random.PRNGKey(0)
    k1, k2, k3, k4, k5 = jax.random.split(key, 5)

    B, n_mel, T = 2, 8, 16
    mel_out = jax.random.normal(k1, (B, n_mel, T), dtype=jnp.float32)
    mel_out_postnet = jax.random.normal(k2, (B, n_mel, T), dtype=jnp.float32)
    mel_target = jax.random.normal(k3, (B, n_mel, T), dtype=jnp.float32)
    gate_out = jax.random.normal(k4, (B, T), dtype=jnp.float32)
    gate_target = (jax.random.uniform(k5, (B, T)) > 0.5).astype(jnp.float32)

    model_output = (mel_out, mel_out_postnet, gate_out, None)
    targets = (mel_target, gate_target)

    loss = tacotron2_loss(model_output, targets)
    jax.block_until_ready(loss)

    ref = _reference_loss(model_output, targets)
    assert jnp.allclose(loss, ref, rtol=1e-5, atol=1e-5), (loss, ref)

    print("KERNEL_OK")
</pallas_src>

<mosaic_0001>
module attributes {stable_mosaic.version = 11 : i64} {
  func.func @kernel(%arg0: i32, %arg1: i32, %arg2: memref<16x16xf32, #tpu.memory_space<vmem>>, %arg3: memref<16x16xf32, #tpu.memory_space<vmem>>, %arg4: memref<16x16xf32, #tpu.memory_space<vmem>>, %arg5: memref<2x16xf32, #tpu.memory_space<vmem>>, %arg6: memref<2x16xf32, #tpu.memory_space<vmem>>, %arg7: memref<8x128xf32, #tpu.memory_space<vmem>>, %arg8: memref<1x16xf32, #tpu.memory_space<vmem>>, %arg9: memref<8x128xf32, #tpu.memory_space<vmem>>) attributes {dimension_semantics = [#tpu.dimension_semantics<arbitrary>, #tpu.dimension_semantics<arbitrary>], iteration_bounds = array<i64: 1, 1>, scalar_prefetch = 0 : i64, scratch_operands = 2 : i64, tpu.core_type = #tpu.core_type<tc>, window_params = [{transform_indices = @transform_0, window_bounds = array<i64: 16, 16>}, {transform_indices = @transform_1, window_bounds = array<i64: 16, 16>}, {transform_indices = @transform_2, window_bounds = array<i64: 16, 16>}, {pipeline_mode = #tpu.pipeline_mode<synchronous>, transform_indices = @transform_3, window_bounds = array<i64: 2, 16>}, {pipeline_mode = #tpu.pipeline_mode<synchronous>, transform_indices = @transform_4, window_bounds = array<i64: 2, 16>}, {transform_indices = @transform_5, window_bounds = array<i64: 8, 128>}]} {
    %c0_i32 = arith.constant 0 : i32
    %0 = arith.cmpi eq, %arg1, %c0_i32 : i32
    %1 = arith.extui %0 : i1 to i32
    %c0_i32_0 = arith.constant 0 : i32
    %2 = arith.cmpi ne, %1, %c0_i32_0 : i32
    scf.if %2 {
      %cst = arith.constant 0.000000e+00 : f32
      %29 = vector.broadcast %cst : f32 to vector<1x16xf32>
      %c0_16 = arith.constant 0 : index
      %c0_17 = arith.constant 0 : index
      %30 = vector.load %arg8[%c0_16, %c0_17] : memref<1x16xf32, #tpu.memory_space<vmem>>, vector<1x16xf32>
      tpu.vector_store %arg8[%c0_16, %c0_17], %29 {strides = array<i32>} : memref<1x16xf32, #tpu.memory_space<vmem>>, vector<1x16xf32>,
      %cst_18 = arith.constant 0.000000e+00 : f32
      %31 = vector.broadcast %cst_18 : f32 to vector<8x128xf32>
      %c0_19 = arith.constant 0 : index
      %c0_20 = arith.constant 0 : index
      %32 = vector.load %arg9[%c0_19, %c0_20] : memref<8x128xf32, #tpu.memory_space<vmem>>, vector<8x128xf32>
      tpu.vector_store %arg9[%c0_19, %c0_20], %31 {strides = array<i32>} : memref<8x128xf32, #tpu.memory_space<vmem>>, vector<8x128xf32>,
    } else {
    }
    %c0_i32_1 = arith.constant 0 : i32
    %3 = arith.cmpi eq, %arg0, %c0_i32_1 : i32
    %c0_i32_2 = arith.constant 0 : i32
    %4 = arith.cmpi eq, %arg1, %c0_i32_2 : i32
    %5 = arith.andi %3, %4 : i1
    %6 = arith.extui %5 : i1 to i32
    %c0_i32_3 = arith.constant 0 : i32
    %7 = arith.cmpi ne, %6, %c0_i32_3 : i32
    scf.if %7 {
      %c0_16 = arith.constant 0 : index
      %c0_17 = arith.constant 0 : index
      %29 = vector.load %arg5[%c0_16, %c0_17] : memref<2x16xf32, #tpu.memory_space<vmem>>, vector<2x16xf32>
      %c0_18 = arith.constant 0 : index
      %c0_19 = arith.constant 0 : index
      %30 = vector.load %arg6[%c0_18, %c0_19] : memref<2x16xf32, #tpu.memory_space<vmem>>, vector<2x16xf32>
      %cst = arith.constant 0.000000e+00 : f32
      %31 = vector.broadcast %cst : f32 to vector<2x16xf32>
      %32 = arith.maximumf %29, %31 : vector<2x16xf32>
      %33 = arith.mulf %29, %30 : vector<2x16xf32>
      %34 = arith.subf %32, %33 : vector<2x16xf32>
      %35 = math.absf %29 : vector<2x16xf32>
      %cst_20 = arith.constant 0.000000e+00 : f32
      %36 = vector.broadcast %cst_20 : f32 to vector<2x16xf32>
      %37 = arith.subf %36, %35 : vector<2x16xf32>
      %38 = math.exp %37 : vector<2x16xf32>
      %39 = math.log1p %38 : vector<2x16xf32>
      %40 = arith.addf %34, %39 : vector<2x16xf32>
      %c0_21 = arith.constant 0 : index
      %c0_22 = arith.constant 0 : index
      %41 = vector.load %arg9[%c0_21, %c0_22] : memref<8x128xf32, #tpu.memory_space<vmem>>, vector<8x128xf32>
      %42 = vector.shape_cast %40 : vector<2x16xf32> to vector<1x2x16xf32>
      %cst_23 = arith.constant dense<0.000000e+00> : vector<1xf32>
      %43 = vector.multi_reduction <add>, %42, %cst_23 [1, 2] : vector<1x2x16xf32> to vector<1xf32>
      %44 = vector.shape_cast %43 : vector<1xf32> to vector<1x1x1xf32>
      %45 = vector.extract %44[0, 0, 0] : f32 from vector<1x1x1xf32>
      %46 = vector.broadcast %45 : f32 to vector<8x128xf32>
      %47 = arith.addf %41, %46 : vector<8x128xf32>
      %c0_24 = arith.constant 0 : index
      %c0_25 = arith.constant 0 : index
      %48 = vector.load %arg9[%c0_24, %c0_25] : memref<8x128xf32, #tpu.memory_space<vmem>>, vector<8x128xf32>
      tpu.vector_store %arg9[%c0_24, %c0_25], %47 {strides = array<i32>} : memref<8x128xf32, #tpu.memory_space<vmem>>, vector<8x128xf32>,
    } else {
    }
    %c0 = arith.constant 0 : index
    %c0_4 = arith.constant 0 : index
    %8 = vector.load %arg4[%c0, %c0_4] : memref<16x16xf32, #tpu.memory_space<vmem>>, vector<16x16xf32>
    %c0_5 = arith.constant 0 : index
    %c0_6 = arith.constant 0 : index
    %9 = vector.load %arg2[%c0_5, %c0_6] : memref<16x16xf32, #tpu.memory_space<vmem>>, vector<16x16xf32>
    %10 = arith.subf %9, %8 : vector<16x16xf32>
    %c0_7 = arith.constant 0 : index
    %c0_8 = arith.constant 0 : index
    %11 = vector.load %arg3[%c0_7, %c0_8] : memref<16x16xf32, #tpu.memory_space<vmem>>, vector<16x16xf32>
    %12 = arith.subf %11, %8 : vector<16x16xf32>
    %13 = arith.mulf %10, %10 : vector<16x16xf32>
    %14 = arith.mulf %12, %12 : vector<16x16xf32>
    %15 = arith.addf %13, %14 : vector<16x16xf32>
    %c1_i32 = arith.constant 1 : i32
    %16 = arith.muli %arg0, %c1_i32 : i32
    %17 = arith.addi %16, %arg1 : i32
    %c16_i32 = arith.constant 16 : i32
    %18 = arith.muli %17, %c16_i32 : i32
    %c16_i32_9 = arith.constant 16 : i32
    %19 = arith.subi %c16_i32_9, %18 : i32
    %c16_i32_10 = arith.constant 16 : i32
    %20 = arith.cmpi sge, %19, %c16_i32_10 : i32
    %21 = arith.extui %20 : i1 to i32
    %c0_i32_11 = arith.constant 0 : i32
    %22 = arith.cmpi ne, %21, %c0_i32_11 : i32
    scf.if %22 {
      %c0_16 = arith.constant 0 : index
      %c0_17 = arith.constant 0 : index
      %29 = vector.load %arg8[%c0_16, %c0_17] : memref<1x16xf32, #tpu.memory_space<vmem>>, vector<1x16xf32>
      %cst = arith.constant dense<0.000000e+00> : vector<16xf32>
      %30 = vector.multi_reduction <add>, %15, %cst [0] : vector<16x16xf32> to vector<16xf32>
      %31 = vector.shape_cast %30 : vector<16xf32> to vector<1x16xf32>
      %32 = arith.addf %29, %31 : vector<1x16xf32>
      %c0_18 = arith.constant 0 : index
      %c0_19 = arith.constant 0 : index
      %33 = vector.load %arg8[%c0_18, %c0_19] : memref<1x16xf32, #tpu.memory_space<vmem>>, vector<1x16xf32>
      tpu.vector_store %arg8[%c0_18, %c0_19], %32 {strides = array<i32>} : memref<1x16xf32, #tpu.memory_space<vmem>>, vector<1x16xf32>,
    } else {
    }
    %c16_i32_12 = arith.constant 16 : i32
    %23 = arith.cmpi slt, %19, %c16_i32_12 : i32
    %24 = arith.extui %23 : i1 to i32
    %c0_i32_13 = arith.constant 0 : i32
    %25 = arith.cmpi ne, %24, %c0_i32_13 : i32
    scf.if %25 {
      %29 = tpu.iota {dimensions = array<i32: 0>} : vector<16x16xi32>
      %30 = vector.broadcast %19 : i32 to vector<16x16xi32>
      %31 = arith.cmpi slt, %29, %30 : vector<16x16xi32>
      %cst = arith.constant 0.000000e+00 : f32
      %32 = vector.broadcast %cst : f32 to vector<16x16xf32>
      %33 = arith.select %31, %15, %32 : vector<16x16xi1>, vector<16x16xf32>
      %c0_16 = arith.constant 0 : index
      %c0_17 = arith.constant 0 : index
      %34 = vector.load %arg8[%c0_16, %c0_17] : memref<1x16xf32, #tpu.memory_space<vmem>>, vector<1x16xf32>
      %cst_18 = arith.constant dense<0.000000e+00> : vector<16xf32>
      %35 = vector.multi_reduction <add>, %33, %cst_18 [0] : vector<16x16xf32> to vector<16xf32>
      %36 = vector.shape_cast %35 : vector<16xf32> to vector<1x16xf32>
      %37 = arith.addf %34, %36 : vector<1x16xf32>
      %c0_19 = arith.constant 0 : index
      %c0_20 = arith.constant 0 : index
      %38 = vector.load %arg8[%c0_19, %c0_20] : memref<1x16xf32, #tpu.memory_space<vmem>>, vector<1x16xf32>
      tpu.vector_store %arg8[%c0_19, %c0_20], %37 {strides = array<i32>} : memref<1x16xf32, #tpu.memory_space<vmem>>, vector<1x16xf32>,
    } else {
    }
    %c0_i32_14 = arith.constant 0 : i32
    %26 = arith.cmpi eq, %arg1, %c0_i32_14 : i32
    %27 = arith.extui %26 : i1 to i32
    %c0_i32_15 = arith.constant 0 : i32
    %28 = arith.cmpi ne, %27, %c0_i32_15 : i32
    scf.if %28 {
      %c0_16 = arith.constant 0 : index
      %c0_17 = arith.constant 0 : index
      %29 = vector.load %arg8[%c0_16, %c0_17] : memref<1x16xf32, #tpu.memory_space<vmem>>, vector<1x16xf32>
      %30 = vector.shape_cast %29 : vector<1x16xf32> to vector<1x1x16xf32>
      %cst = arith.constant dense<0.000000e+00> : vector<1xf32>
      %31 = vector.multi_reduction <add>, %30, %cst [1, 2] : vector<1x1x16xf32> to vector<1xf32>
      %32 = vector.shape_cast %31 : vector<1xf32> to vector<1x1x1xf32>
      %33 = vector.extract %32[0, 0, 0] : f32 from vector<1x1x1xf32>
      %cst_18 = arith.constant 3.906250e-03 : f32
      %34 = arith.mulf %33, %cst_18 : f32
      %c0_19 = arith.constant 0 : index
      %c0_20 = arith.constant 0 : index
      %35 = vector.load %arg9[%c0_19, %c0_20] : memref<8x128xf32, #tpu.memory_space<vmem>>, vector<8x128xf32>
      %cst_21 = arith.constant 3.125000e-02 : f32
      %36 = vector.broadcast %cst_21 : f32 to vector<8x128xf32>
      %37 = arith.mulf %35, %36 : vector<8x128xf32>
      %38 = vector.broadcast %34 : f32 to vector<8x128xf32>
      %39 = arith.addf %38, %37 : vector<8x128xf32>
      %c0_22 = arith.constant 0 : index
      %c0_23 = arith.constant 0 : index
      %40 = vector.load %arg7[%c0_22, %c0_23] : memref<8x128xf32, #tpu.memory_space<vmem>>, vector<8x128xf32>
      tpu.vector_store %arg7[%c0_22, %c0_23], %39 {strides = array<i32>} : memref<8x128xf32, #tpu.memory_space<vmem>>, vector<8x128xf32>,
    } else {
    }
    return
  }
  func.func @transform_0(%arg0: i32, %arg1: i32) -> (i32, i32) {
    %c1_i32 = arith.constant 1 : i32
    %0 = arith.muli %arg0, %c1_i32 : i32
    %1 = arith.addi %0, %arg1 : i32
    %c0_i32 = arith.constant 0 : i32
    %2 = arith.minsi %1, %c0_i32 : i32
    %c0_i32_0 = arith.constant 0 : i32
    %c0_i32_1 = arith.constant 0 : i32
    return %2, %c0_i32_0 : i32, i32
  }
  func.func @transform_1(%arg0: i32, %arg1: i32) -> (i32, i32) {
    %c1_i32 = arith.constant 1 : i32
    %0 = arith.muli %arg0, %c1_i32 : i32
    %1 = arith.addi %0, %arg1 : i32
    %c0_i32 = arith.constant 0 : i32
    %2 = arith.minsi %1, %c0_i32 : i32
    %c0_i32_0 = arith.constant 0 : i32
    %c0_i32_1 = arith.constant 0 : i32
    return %2, %c0_i32_0 : i32, i32
  }
  func.func @transform_2(%arg0: i32, %arg1: i32) -> (i32, i32) {
    %c1_i32 = arith.constant 1 : i32
    %0 = arith.muli %arg0, %c1_i32 : i32
    %1 = arith.addi %0, %arg1 : i32
    %c0_i32 = arith.constant 0 : i32
    %2 = arith.minsi %1, %c0_i32 : i32
    %c0_i32_0 = arith.constant 0 : i32
    %c0_i32_1 = arith.constant 0 : i32
    return %2, %c0_i32_0 : i32, i32
  }
  func.func @transform_3(%arg0: i32, %arg1: i32) -> (i32, i32) {
    %c0_i32 = arith.constant 0 : i32
    %c0_i32_0 = arith.constant 0 : i32
    %c0_i32_1 = arith.constant 0 : i32
    return %c0_i32, %c0_i32_0 : i32, i32
  }
  func.func @transform_4(%arg0: i32, %arg1: i32) -> (i32, i32) {
    %c0_i32 = arith.constant 0 : i32
    %c0_i32_0 = arith.constant 0 : i32
    %c0_i32_1 = arith.constant 0 : i32
    return %c0_i32, %c0_i32_0 : i32, i32
  }
  func.func @transform_5(%arg0: i32, %arg1: i32) -> (i32, i32) {
    %c0_i32 = arith.constant 0 : i32
    %c0_i32_0 = arith.constant 0 : i32
    return %arg0, %c0_i32 : i32, i32
  }
}

</mosaic_0001>

<bundles_post_ra>
// kernel: tpu_custom_call.1
= control target key start
LH: loop header
LB: loop body
LE: loop exit
PB: predicated region body
PF: predicated region fallthrough
CT: control target
= control target key end

     0   :  { %10 = vsyncpa [#allocation5], 0  ;;  %s463_s0 = inlined_call_operand.hbm [shape: f32[16,16], index: 0, kind: input, shape index: {}]   ;;  %s464_s1 = inlined_call_operand.hbm [shape: f32[16,16], index: 1, kind: input, shape index: {}]   ;;  %s465_s2 = inlined_call_operand.hbm [shape: f32[16,16], index: 2, kind: input, shape index: {}]   ;;  %s466_s3 = inlined_call_operand.vmem [shape: f32[2,16], index: 3, kind: input, shape index: {}]   ;;  %s467_s4 = inlined_call_operand.vmem [shape: f32[2,16], index: 4, kind: input, shape index: {}]   ;;  %s468_s5 = inlined_call_operand.hbm [shape: f32[8,128], index: 5, kind: output, shape index: {}]  }
   0x1   :  { %11 = vsyncpa [#allocation8], 0 }
   0x2   :  { %12 = vsyncpa [#allocation6], 0  ;;  %s353_s18 = smov [#allocation7]   ;;  %s354_s20 = smov [#allocation4]  }
   0x3   :  { %s42_s19 = sshll.u32 %s353_s18, 4  ;;  %s24_s21 = sshll.u32 %s354_s20, 4  ;;  %s43_s19 = int_to_ptr.vmem [resolvable:$true] %s42_s19  ;;  %s390_s21 = int_to_ptr.vmem [resolvable:$true] %s24_s21 }
   0x4   :  { %s259_s24 = scalar_lea.hbm %s464_s1, 256 }
   0x5   :  { %p260_p0 = scmp.ne.s32.totalorder %s464_s1, %s259_s24  ;;  %p263_p1 = scmp.lt.u32.totalorder %s259_s24, %s464_s1 }
   0x7   :  { %p265_p2 = pnand %p263_p1, %p260_p0 }
   0x9   :  { %268 = shalt.err (!%p265_p2)
}
   0xa   :  { %s269_s29 = scalar_lea.vmem %s43_s19, 256  ;;  %p274_p4 = scmp.lt.s32.totalorder %s43_s19, %s43_s19 }
   0xb   :  { %p270_p3 = scmp.ne.s32.totalorder %s43_s19, %s269_s29  ;;  %p275_p5 = scmp.lt.s32.totalorder %s269_s29, %s269_s29 }
   0xd   :  { %p276_p6 = por %p275_p5, %p274_p4 }
   0xf   :  { %p277_p7 = pnand %p276_p6, %p270_p3 }
  0x11   :  { %280 = shalt.err (!%p277_p7)
}
  0x12   :  { %s355_s30 = smov 128   ;;  %s356_s6 = smov 8  }
  0x13   :  { %48 = dma.hbm_to_vmem [thread:$0]  %s464_s1, 256, %s43_s19, [#allocation8], %s355_s30, %s355_s30, %s356_s6  }
  0x14   :  { %s281_s11 = scalar_lea.hbm %s463_s0, 256 }
  0x15   :  { %p282_p8 = scmp.ne.s32.totalorder %s463_s0, %s281_s11  ;;  %p285_p9 = scmp.lt.u32.totalorder %s281_s11, %s463_s0 }
  0x17   :  { %p287_p10 = pnand %p285_p9, %p282_p8 }
  0x19   :  { %290 = shalt.err (!%p287_p10)
}
  0x1a   :  { %s291_s16 = scalar_lea.vmem %s390_s21, 256  ;;  %p296_p12 = scmp.lt.s32.totalorder %s390_s21, %s390_s21 }
  0x1b   :  { %p292_p11 = scmp.ne.s32.totalorder %s390_s21, %s291_s16  ;;  %p297_p13 = scmp.lt.s32.totalorder %s291_s16, %s291_s16 }
  0x1d   :  { %p298_p0 = por %p297_p13, %p296_p12 }
  0x1f   :  { %p299_p1 = pnand %p298_p0, %p292_p11 }
  0x21   :  { %302 = shalt.err (!%p299_p1)
}
  0x22   :  { %30 = dma.hbm_to_vmem [thread:$0]  %s463_s0, 256, %s390_s21, [#allocation5], %s355_s30, %s355_s30, %s356_s6  }
  0x23   :  { %s357_s18 = smov [#allocation9]   ;;  %s303_s23 = scalar_lea.hbm %s465_s2, 256 }
  0x24   :  { %s60_s19 = sshll.u32 %s357_s18, 4  ;;  %p304_p2 = scmp.ne.s32.totalorder %s465_s2, %s303_s23  ;;  %s61_s19 = int_to_ptr.vmem [resolvable:$true] %s60_s19 }
  0x25   :  { %p307_p3 = scmp.lt.u32.totalorder %s303_s23, %s465_s2 }
  0x27   :  { %p309_p4 = pnand %p307_p3, %p304_p2 }
  0x29   :  { %312 = shalt.err (!%p309_p4)
}
  0x2a   :  { %s313_s28 = scalar_lea.vmem %s61_s19, 256  ;;  %p318_p6 = scmp.lt.s32.totalorder %s61_s19, %s61_s19 }
  0x2b   :  { %p314_p5 = scmp.ne.s32.totalorder %s61_s19, %s313_s28  ;;  %p319_p7 = scmp.lt.s32.totalorder %s313_s28, %s313_s28 }
  0x2d   :  { %p320_p8 = por %p319_p7, %p318_p6 }
  0x2f   :  { %p321_p9 = pnand %p320_p8, %p314_p5 }
  0x31   :  { %324 = shalt.err (!%p321_p9)
}
  0x32   :  { %66 = dma.hbm_to_vmem [thread:$0]  %s465_s2, 256, %s61_s19, [#allocation8], %s355_s30, %s355_s30, %s356_s6  }
  0x33   :  { %347 = dma.done.wait [#allocation5], 256  }
  0x34   :  { %348 = vsyncadd [#allocation5], 4294967040 }
  0x35   :  { %349 = dma.done.wait [#allocation8], 512  }
  0x36   :  { %350 = vsyncadd [#allocation8], 4294966784  ;;  %vm96_vm0 = vcmask 122880   ;;  %v358_v0 = vmov 0.0   ;;  %v104_v1 = vld [vmem:[%s466_s3] sm:$0x3] }
  0x37   :  { %97 = vst.msk [vmem:[#allocation2] sm:$0x1] %vm96_vm0, %v358_v0  ;;  %v138_v2 = vld [vmem:[#allocation9] sm:$0xff]  ;;  %v109_v3 = vand.u32 2147483647, %v104_v1  ;;  %v139_v4 = vld [vmem:[#allocation9 + $0x8] sm:$0xff] }
  0x38   :  { %v140_v5 = vld [vmem:[#allocation4] sm:$0xff]  ;;  %v141_v6 = vld [vmem:[#allocation4 + $0x8] sm:$0xff]  ;;  %v144_v9 = vld [vmem:[#allocation7] sm:$0xff]  ;;  %vm162_vm1 = vcmask 130048   ;;  %v106_v37 = vmax.f32 %v104_v1, 0.0  ;;  %vm124_vm3 = vcmask 123904  }
  0x39   :  { %v142_v7 = vsub.f32 %v140_v5, %v138_v2  ;;  %v143_v8 = vsub.f32 %v141_v6, %v139_v4  ;;  %v145_v10 = vld [vmem:[#allocation7 + $0x8] sm:$0xff]  ;;  %v110_v11 = vsub.f32 0.0, %v109_v3  ;;  %v146_v12 = vsub.f32 %v144_v9, %v138_v2  ;;  %s359_s8 = smov [#allocation10]  }
  0x3a   :  { %v147_v13 = vsub.f32 %v145_v10, %v139_v4  ;;  %v105_v34 = vld [vmem:[%s467_s4] sm:$0x3]  ;;  %s228_s9 = sshll.u32 %s359_s8, 4  ;;  %s229_s9 = int_to_ptr.vmem [resolvable:$true] %s228_s9 }
  0x3b   :  { %v148_v14 = vmul.f32 %v142_v7, %v142_v7  ;;  %v149_v15 = vmul.f32 %v143_v8, %v143_v8  ;;  %v111_v16 = vmul.f32 1.442695, %v110_v11  ;;  %v150_v17 = vmul.f32 %v146_v12, %v146_v12  ;;  %s325_s10 = scalar_lea.vmem %s229_s9, 128  ;;  %p330_p11 = scmp.lt.s32.totalorder %s229_s9, %s229_s9 }
  0x3c   :  { %v151_v18 = vmul.f32 %v147_v13, %v147_v13  ;;  %v107_v38 = vmul.f32 %v105_v34, %v104_v1  ;;  %p326_p10 = scmp.ne.s32.totalorder %s229_s9, %s325_s10  ;;  %p331_p12 = scmp.lt.s32.totalorder %s325_s10, %s325_s10 }
  0x3d   :  { %255 = vpow2.f32 %v111_v16  ;;  %v152_v19 = vadd.f32 %v150_v17, %v148_v14 }
  0x3e   :  { %v153_v20 = vadd.f32 %v151_v18, %v149_v15  ;;  %v161_v32 = vld [vmem:[#allocation2] sm:$0x1]  ;;  %v108_v42 = vsub.f32 %v106_v37, %v107_v38  ;;  %p332_p13 = por %p331_p12, %p330_p11 }
  0x3f   :  { %v163_v21 = vsel %vm162_vm1, %v152_v19, 0.0 }
  0x40   :  { %v164_v22 = vsel %vm162_vm1, %v153_v20, 0.0  ;;  %p333_p0 = pnand %p332_p13, %p326_p10 }
  0x41   :  { %v165_v23 = vadd.f32 %v164_v22, %v163_v21 }
  0x43   :  { %v166_v24 = vrot.slane %v165_v23, 4 }
  0x45   :  { %v167_v25 = vadd.f32 %v166_v24, %v165_v23 }
  0x47   :  { %v168_v26 = vrot.slane %v167_v25, 2  ;;  %v256_v27 = vpop.eup %255 }
  0x48   :  { %v113_v28 = vadd.f32 1.0, %v256_v27  ;;  %v116_v31 = vmul.f32 -0.5, %v256_v27  ;;  %v119_v39 = vand.u32 2147483647, %v256_v27 }
  0x49   :  { %v169_v29 = vadd.f32 %v168_v26, %v167_v25 }
  0x4a   :  { %257 = vlog2.f32 %v113_v28  ;;  %v117_v36 = vadd.f32 1.0, %v116_v31  ;;  %vm120_vm2 = vcmp.lt.f32.partialorder %v119_v39, 0.0004427343 }
  0x4b   :  { %v170_v30 = vrot.slane %v169_v29, 1 }
  0x4c   :  { %v118_v40 = vmul.f32 %v256_v27, %v117_v36 }
  0x4d   :  { %v171_v33 = vadd.f32 %v170_v30, %v169_v29 }
  0x4f   :  { %v172_v35 = vadd.f32 %v171_v33, %v161_v32 }
  0x51   :  { %174 = vst.msk [vmem:[#allocation2] sm:$0x1] %vm96_vm0, %v172_v35 }
  0x54   :  { %v258_v41 = vpop.eup %257 }
  0x55   :  { %v115_v43 = vmul.f32 0.6931472, %v258_v41 }
  0x57   :  { %v121_v44 = vsel %vm120_vm2, %v118_v40, %v115_v43 }
  0x58   :  { %v122_v45 = vadd.f32 %v121_v44, %v108_v42  ;;  %v204_v46 = vld [vmem:[#allocation2] sm:$0x1] }
  0x59   :  { %v206_v48 = vsel %vm96_vm0, %v204_v46, 0.0 }
  0x5a   :  { %v125_v47 = vsel %vm124_vm3, %v122_v45, 0.0 }
  0x5b   :  { %126 = vadd.xlane.f32.xlu0 %v125_v47 }
  0x5f   :  { %207 = vadd.xlane.f32.xlu0 %v206_v48 }
  0xe8   :  { %v127_v49 = vpop.xlane.xlu0 %126 }
  0xe9   :  { %v128_v50 = vrot.slane %v127_v49, 4 }
  0xeb   :  { %v129_v51 = vadd.f32 %v128_v50, %v127_v49 }
  0xec   :  { %v208_v52 = vpop.xlane.xlu0 %207 }
  0xed   :  { %v130_v53 = vrot.slane %v129_v51, 2  ;;  %v209_v54 = vrot.slane %v208_v52, 4 }
  0xef   :  { %v210_v55 = vadd.f32 %v209_v54, %v208_v52  ;;  %v131_v56 = vadd.f32 %v130_v53, %v129_v51 }
  0xf1   :  { %v211_v57 = vrot.slane %v210_v55, 2  ;;  %v132_v58 = vrot.slane %v131_v56, 1 }
  0xf3   :  { %v212_v59 = vadd.f32 %v211_v57, %v210_v55  ;;  %v133_v60 = vadd.f32 %v132_v58, %v131_v56 }
  0xf5   :  { %244 = vpush %v133_v60  ;;  %v213_v61 = vrot.slane %v212_v59, 1 }
  0xf7   :  { %v214_v62 = vadd.f32 %v213_v61, %v212_v59 }
  0xf9   :  { %246 = vpush %v214_v62 }
 0x126   :  { %s245_s4 = spop %244 }
 0x127   :  { %v135_v63 = vstv %s245_s4 }
 0x128   :  { %v218_v0 = vmul.f32 0.03125, %v135_v63 }
 0x12a   :  { %s247_s30 = spop %246 }
 0x12b   :  { %s216_s6 = smul.f32 0.00390625, %s247_s30 }
 0x12d   :  { %v219_v1 = vstv %s216_s6 }
 0x12e   :  { %v220_v2 = vadd.f32 %v219_v1, %v218_v0 }
 0x130   :  { %221 = vst [vmem:[#allocation10] sm:$0xff] %v220_v2 }
 0x131   :  { %336 = shalt.err (!%p333_p0)
}
 0x132   :  { %s337_s13 = scalar_lea.hbm %s468_s5, 128 }
 0x133   :  { %p338_p1 = scmp.ne.s32.totalorder %s468_s5, %s337_s13  ;;  %p341_p2 = scmp.lt.u32.totalorder %s337_s13, %s468_s5 }
 0x135   :  { %p343_p3 = pnand %p341_p2, %p338_p1 }
 0x137   :  { %346 = shalt.err (!%p343_p3)
}
 0x138   :  { %231 = dma.vmem_to_hbm [thread:$0]  %s229_s9, 128, %s468_s5, [#allocation6]  }
 0x139   :  { %351 = dma.done.wait [#allocation6], 128  }
 0x13a   :  { %352 = vsyncadd [#allocation6], 4294967168 }
 0x13b   :  { %235 = vsyncpa [#allocation5], 1 }
 0x13c   :  { %236 = vsyncpa [#allocation8], 1 }
 0x13d   :  { %237 = vsyncpa [#allocation6], 1 }

</bundles_post_ra>
